<compile_context>
chip_gen: v5e
topology: v5e:2x2
jax: 0.10.0
libtpu: 0.0.40
codegen_flags: <defaults>
</compile_context>

<pallas_src>
import functools

import jax
import jax.numpy as jnp
from jax import lax
from jax.experimental import pallas as pl
from jax.experimental.pallas import tpu as pltpu


def _nchw_to_tokens(x):
    b, c, h, w = x.shape
    return jnp.transpose(x, (0, 2, 3, 1)).reshape(b, h * w, c)


def _choose_tq(hw, cap=256):
    """Largest query tile <= cap that divides hw (multiple of 8), else full hw."""
    if hw <= cap:
        return hw
    for t in range(cap, 7, -8):
        if hw % t == 0:
            return t
    return hw


def _vmem_limit_bytes(hw, tq, c, rc):
    """Tile-math based scoped-VMEM budget (padded to (8,128) vreg tiles)."""
    def pad(n, m):
        return ((n + m - 1) // m) * m

    def tile_bytes(r, cdim, itemsize=4):
        return pad(r, 8) * pad(cdim, 128) * itemsize

    io = 2 * (tile_bytes(tq, c) + tile_bytes(tq, 1) + tile_bytes(tq, rc)     # self inputs
              + tile_bytes(hw, c) + tile_bytes(hw, rc)                       # other inputs
              + tile_bytes(tq, 1) + tile_bytes(1, hw)                        # row/col mod
              + tile_bytes(tq, c) + tile_bytes(tq, 1))                       # outputs
    weights = (tile_bytes(c, rc) + 3 * tile_bytes(1, rc) + tile_bytes(c, 2 * rc)
               + tile_bytes(1, 2 * rc) + tile_bytes(rc, c) + 3 * tile_bytes(1, c))
    scratch = 2 * tile_bytes(hw, rc, 2)          # bf16 phi/g caches
    interm = 4 * tile_bytes(tq, hw)              # scores, exp, products, slack
    total = int(1.5 * (io + weights + scratch + interm))
    return max(32 * 1024 * 1024, min(total, 60 * 1024 * 1024))


def _co_nonlocal_kernel(
    x_self_ref, x_other_ref, pre_ref, q_ref, k_ref,
    rowmod_ref, colmod_ref,
    theta_wx_ref, theta_wp_ref, theta_b_ref,
    pg_w_ref, pg_b_ref,
    up_w_ref, up_b_ref,
    bn_scale_ref, bn_shift_ref,
    out_ref, idx_ref,
    phi_scr, g_scr,
    *, w, rc):
    """Grid = (batch, side, query_tile).  One (TQ, hw) attention slab per step."""
    qi = pl.program_id(2)
    inv_w = jnp.float32(1.0 / w)

    # --- kv-side fused phi/g projection: compute once per (batch, side), cache in scratch.
    @pl.when(qi == 0)
    def _():
        x_other = x_other_ref[0, 0].astype(jnp.float32)              # (hw, c)
        pg = jnp.dot(x_other, pg_w_ref[...],
                     preferred_element_type=jnp.float32) + pg_b_ref[...]   # (hw, 2rc)
        phi = pg[:, :rc] + k_ref[0, 0].astype(jnp.float32)           # (hw, rc)
        g = pg[:, rc:]                                               # (hw, rc)
        phi_scr[...] = phi.astype(phi_scr.dtype)
        g_scr[...] = g.astype(g_scr.dtype)

    # --- query-side projection for this tile.
    x_self = x_self_ref[0, 0].astype(jnp.float32)                    # (TQ, c)
    theta = (jnp.dot(x_self, theta_wx_ref[...],
                     preferred_element_type=jnp.float32)
             + (pre_ref[0, 0].astype(jnp.float32) * inv_w) * theta_wp_ref[...]
             + theta_b_ref[...]
             + q_ref[0, 0].astype(jnp.float32))                      # (TQ, rc)

    # --- scores: bf16 MXU inputs, f32 accumulate.  Softmax kept un-normalized.
    s = lax.dot_general(theta.astype(jnp.bfloat16), phi_scr[...],
                        (((1,), (1,)), ((), ())),
                        preferred_element_type=jnp.float32)          # (TQ, hw)
    m = jnp.max(s, axis=-1, keepdims=True)
    e = jnp.exp(s - m)                                               # f32
    recip = pl.reciprocal(jnp.sum(e, axis=-1, keepdims=True), approx=True)   # (TQ, 1)

    # soft index expectation:  (i % w) - sum_j softmax(s)_ij * (j % w)
    max_idx = jnp.sum(e * colmod_ref[...], axis=-1, keepdims=True) * recip
    idx = rowmod_ref[...] - max_idx                                  # (TQ, 1)

    # attention-weighted values without materializing the normalized attention.
    after = jnp.dot(e.astype(jnp.bfloat16), g_scr[...],
                    preferred_element_type=jnp.float32) * recip      # (TQ, rc)

    up = jnp.dot(after, up_w_ref[...],
                 preferred_element_type=jnp.float32) + up_b_ref[...]  # (TQ, c)
    up = up * bn_scale_ref[...] + bn_shift_ref[...]                  # folded BatchNorm

    out_ref[0, 0] = (x_self + up).astype(out_ref.dtype)
    idx_ref[0, 0] = idx.astype(idx_ref.dtype)


def init_params(key, in_channels, rep_channels):
    """Deterministic parameter init matching the module's __init__ shapes."""
    c, rc = in_channels, rep_channels
    ks = jax.random.split(key, 8)

    def conv_w(k, out_c, in_c):
        bound = 1.0 / jnp.sqrt(jnp.float32(in_c))
        return jax.random.uniform(k, (out_c, in_c), jnp.float32, -bound, bound)

    def conv_b(k, out_c, in_c):
        bound = 1.0 / jnp.sqrt(jnp.float32(in_c))
        return jax.random.uniform(k, (out_c,), jnp.float32, -bound, bound)

    return {
        "theta_w": conv_w(ks[0], rc, c + 1),   # Conv2d(in+1, rc, 1)
        "theta_b": conv_b(ks[1], rc, c + 1),
        "phi_w": conv_w(ks[2], rc, c),         # Conv2d(in, rc, 1)
        "phi_b": conv_b(ks[3], rc, c),
        "g_w": conv_w(ks[4], rc, c),           # Conv2d(in, rc, 1)
        "g_b": conv_b(ks[5], rc, c),
        "up_w": conv_w(ks[6], c, rc),          # Conv2d(rc, in, 1)
        "up_b": conv_b(ks[7], c, rc),
        "bn_gamma": jnp.zeros((c,), jnp.float32),   # nn.init.constant_(bn.weight, 0)
        "bn_beta": jnp.zeros((c,), jnp.float32),    # nn.init.constant_(bn.bias, 0)
        "bn_mean": jnp.zeros((c,), jnp.float32),
        "bn_var": jnp.ones((c,), jnp.float32),
    }


def co_non_local_forward(left, right, pre_l, pre_r,
                         query_l, key_l, query_r, key_r, params):
    b, c, h, w = left.shape
    hw = h * w
    rc = params["theta_w"].shape[0]
    out_dtype = left.dtype

    # Stack the two sides so a "side" grid axis selects self/other via index_map.
    xs = jnp.stack([_nchw_to_tokens(left), _nchw_to_tokens(right)], axis=1)       # (b,2,hw,c)
    pres = jnp.stack([_nchw_to_tokens(pre_l), _nchw_to_tokens(pre_r)], axis=1)    # (b,2,hw,1)
    qs = jnp.stack([_nchw_to_tokens(query_l), _nchw_to_tokens(query_r)], axis=1)  # (b,2,hw,rc)
    ks = jnp.stack([_nchw_to_tokens(key_l), _nchw_to_tokens(key_r)], axis=1)      # (b,2,hw,rc)

    theta_w = params["theta_w"]                                   # (rc, c+1)
    theta_wxT = theta_w[:, :c].T.astype(jnp.float32)              # (c, rc)
    theta_wp = theta_w[:, c:].T.astype(jnp.float32)               # (1, rc)  ("pre" column)
    theta_b = params["theta_b"].reshape(1, rc).astype(jnp.float32)
    # Fused phi/g projection weight: one (c, 2rc) matmul per kv side, sliced in-kernel.
    pg_wT = jnp.concatenate([params["phi_w"], params["g_w"]], axis=0).T.astype(jnp.float32)
    pg_b = jnp.concatenate([params["phi_b"], params["g_b"]]).reshape(1, 2 * rc).astype(jnp.float32)
    up_wT = params["up_w"].T.astype(jnp.float32)                  # (rc, c)
    up_b = params["up_b"].reshape(1, c).astype(jnp.float32)

    # TODO(synk): BatchNorm folded with inference running stats; training-mode batch
    # statistics are not emulated (output identical here since gamma=beta=0 at init).
    eps = jnp.float32(1e-5)
    scale_v = params["bn_gamma"] / jnp.sqrt(params["bn_var"] + eps)
    shift_v = params["bn_beta"] - params["bn_mean"] * scale_v
    bn_scale = scale_v.reshape(1, c).astype(jnp.float32)
    bn_shift = shift_v.reshape(1, c).astype(jnp.float32)

    # Precomputed (i % w) / (j % w) vectors (no per-step iota+mod in the kernel).
    mods = (jnp.arange(hw, dtype=jnp.int32) % w).astype(jnp.float32)
    rowmod = mods.reshape(hw, 1)
    colmod = mods.reshape(1, hw)

    tq = _choose_tq(hw)
    nq = hw // tq
    grid = (b, 2, nq)

    def self_spec(ch):
        return pl.BlockSpec((1, 1, tq, ch), lambda i, s, q: (i, s, q, 0))

    def other_spec(ch):
        return pl.BlockSpec((1, 1, hw, ch), lambda i, s, q: (i, 1 - s, 0, 0))

    def full2d(p):
        return pl.BlockSpec(p.shape, lambda i, s, q: (0, 0))

    in_specs = [
        self_spec(c),                                              # x_self tile
        other_spec(c),                                             # x_other (resident across q)
        self_spec(1),                                              # pre_self tile
        self_spec(rc),                                             # query_self tile
        other_spec(rc),                                            # key_other (resident across q)
        pl.BlockSpec((tq, 1), lambda i, s, q: (q, 0)),             # rowmod tile
        full2d(colmod),
        full2d(theta_wxT), full2d(theta_wp), full2d(theta_b),
        full2d(pg_wT), full2d(pg_b),
        full2d(up_wT), full2d(up_b),
        full2d(bn_scale), full2d(bn_shift),
    ]
    out_shapes = (
        jax.ShapeDtypeStruct((b, 2, hw, c), out_dtype),
        jax.ShapeDtypeStruct((b, 2, hw, 1), jnp.float32),
    )
    out_specs = [self_spec(c), self_spec(1)]

    kernel = functools.partial(_co_nonlocal_kernel, w=w, rc=rc)
    out, idx = pl.pallas_call(
        kernel,
        out_shape=out_shapes,
        grid=grid,
        in_specs=in_specs,
        out_specs=out_specs,
        scratch_shapes=[pltpu.VMEM((hw, rc), jnp.bfloat16),        # phi (other side)
                        pltpu.VMEM((hw, rc), jnp.bfloat16)],       # g   (other side)
        compiler_params=pltpu.CompilerParams(
            dimension_semantics=("parallel", "parallel", "arbitrary"),
            vmem_limit_bytes=_vmem_limit_bytes(hw, tq, c, rc)),
    )(xs, xs, pres, qs, ks, rowmod, colmod,
      theta_wxT, theta_wp, theta_b, pg_wT, pg_b, up_wT, up_b, bn_scale, bn_shift)

    l_n = jnp.transpose(out[:, 0].reshape(b, h, w, c), (0, 3, 1, 2))
    r_n = jnp.transpose(out[:, 1].reshape(b, h, w, c), (0, 3, 1, 2))
    index_l = idx[:, 0, :, 0].reshape(b, h, w)
    index_r = idx[:, 1, :, 0].reshape(b, h, w)
    return l_n, r_n, index_l, index_r


if __name__ == "__main__":
    b, c, h, w = 2, 4, 8, 8
    rc = c // 2  # rep_channels default: in_channels // 2

    root = jax.random.PRNGKey(0)
    keys = jax.random.split(root, 9)
    left = jax.random.normal(keys[0], (b, c, h, w), jnp.float32)
    right = jax.random.normal(keys[1], (b, c, h, w), jnp.float32)
    pre_l = jax.random.normal(keys[2], (b, 1, h, w), jnp.float32)
    pre_r = jax.random.normal(keys[3], (b, 1, h, w), jnp.float32)
    query_l = jax.random.normal(keys[4], (b, rc, h, w), jnp.float32)
    key_l = jax.random.normal(keys[5], (b, rc, h, w), jnp.float32)
    query_r = jax.random.normal(keys[6], (b, rc, h, w), jnp.float32)
    key_r = jax.random.normal(keys[7], (b, rc, h, w), jnp.float32)

    params = init_params(keys[8], c, rc)

    outs = co_non_local_forward(left, right, pre_l, pre_r,
                                query_l, key_l, query_r, key_r, params)
    outs = jax.tree_util.tree_map(jax.block_until_ready, outs)

    l_n, r_n, index_l, index_r = outs
    assert l_n.shape == (b, c, h, w) and r_n.shape == (b, c, h, w)
    assert index_l.shape == (b, h, w) and index_r.shape == (b, h, w)
    # With default init (BN gamma=beta=0) the up-branch is exactly zero -> residual only.
    assert jnp.allclose(l_n, left, atol=1e-5) and jnp.allclose(r_n, right, atol=1e-5)
    assert bool(jnp.all(jnp.isfinite(index_l))) and bool(jnp.all(jnp.isfinite(index_r)))
    print("KERNEL_OK")
</pallas_src>

<mosaic_0001>
module attributes {stable_mosaic.version = 11 : i64} {
  func.func @_co_nonlocal_kernel(%arg0: i32, %arg1: i32, %arg2: i32, %arg3: memref<1x1x64x4xf32, #tpu.memory_space<vmem>>, %arg4: memref<1x1x64x4xf32, #tpu.memory_space<vmem>>, %arg5: memref<1x1x64x1xf32, #tpu.memory_space<vmem>>, %arg6: memref<1x1x64x2xf32, #tpu.memory_space<vmem>>, %arg7: memref<1x1x64x2xf32, #tpu.memory_space<vmem>>, %arg8: memref<64x1xf32, #tpu.memory_space<vmem>>, %arg9: memref<1x64xf32, #tpu.memory_space<vmem>>, %arg10: memref<4x2xf32, #tpu.memory_space<vmem>>, %arg11: memref<1x2xf32, #tpu.memory_space<vmem>>, %arg12: memref<1x2xf32, #tpu.memory_space<vmem>>, %arg13: memref<4x4xf32, #tpu.memory_space<vmem>>, %arg14: memref<1x4xf32, #tpu.memory_space<vmem>>, %arg15: memref<2x4xf32, #tpu.memory_space<vmem>>, %arg16: memref<1x4xf32, #tpu.memory_space<vmem>>, %arg17: memref<1x4xf32, #tpu.memory_space<vmem>>, %arg18: memref<1x4xf32, #tpu.memory_space<vmem>>, %arg19: memref<1x1x64x4xf32, #tpu.memory_space<vmem>>, %arg20: memref<1x1x64x1xf32, #tpu.memory_space<vmem>>, %arg21: memref<64x2xbf16, #tpu.memory_space<vmem>>, %arg22: memref<64x2xbf16, #tpu.memory_space<vmem>>) attributes {dimension_semantics = [#tpu.dimension_semantics<parallel>, #tpu.dimension_semantics<parallel>, #tpu.dimension_semantics<arbitrary>], iteration_bounds = array<i64: 2, 2, 1>, scalar_prefetch = 0 : i64, scratch_operands = 2 : i64, tpu.core_type = #tpu.core_type<tc>, window_params = [{transform_indices = @transform_0, window_bounds = array<i64: 1, 1, 64, 4>}, {transform_indices = @transform_1, window_bounds = array<i64: 1, 1, 64, 4>}, {transform_indices = @transform_2, window_bounds = array<i64: 1, 1, 64, 1>}, {transform_indices = @transform_3, window_bounds = array<i64: 1, 1, 64, 2>}, {transform_indices = @transform_4, window_bounds = array<i64: 1, 1, 64, 2>}, {transform_indices = @transform_5, window_bounds = array<i64: 64, 1>}, {pipeline_mode = #tpu.pipeline_mode<synchronous>, transform_indices = @transform_6, window_bounds = array<i64: 1, 64>}, {pipeline_mode = #tpu.pipeline_mode<synchronous>, transform_indices = @transform_7, window_bounds = array<i64: 4, 2>}, {pipeline_mode = #tpu.pipeline_mode<synchronous>, transform_indices = @transform_8, window_bounds = array<i64: 1, 2>}, {pipeline_mode = #tpu.pipeline_mode<synchronous>, transform_indices = @transform_9, window_bounds = array<i64: 1, 2>}, {pipeline_mode = #tpu.pipeline_mode<synchronous>, transform_indices = @transform_10, window_bounds = array<i64: 4, 4>}, {pipeline_mode = #tpu.pipeline_mode<synchronous>, transform_indices = @transform_11, window_bounds = array<i64: 1, 4>}, {pipeline_mode = #tpu.pipeline_mode<synchronous>, transform_indices = @transform_12, window_bounds = array<i64: 2, 4>}, {pipeline_mode = #tpu.pipeline_mode<synchronous>, transform_indices = @transform_13, window_bounds = array<i64: 1, 4>}, {pipeline_mode = #tpu.pipeline_mode<synchronous>, transform_indices = @transform_14, window_bounds = array<i64: 1, 4>}, {pipeline_mode = #tpu.pipeline_mode<synchronous>, transform_indices = @transform_15, window_bounds = array<i64: 1, 4>}, {transform_indices = @transform_16, window_bounds = array<i64: 1, 1, 64, 4>}, {transform_indices = @transform_17, window_bounds = array<i64: 1, 1, 64, 1>}]} {
    %c0_i32 = arith.constant 0 : i32
    %0 = arith.cmpi eq, %arg2, %c0_i32 : i32
    %1 = arith.extui %0 : i1 to i32
    %c0_i32_0 = arith.constant 0 : i32
    %2 = arith.cmpi ne, %1, %c0_i32_0 : i32
    scf.if %2 {
      %c0_49 = arith.constant 0 : index
      %c0_50 = arith.constant 0 : index
      %c0_51 = arith.constant 0 : index
      %c0_52 = arith.constant 0 : index
      %64 = vector.load %arg4[%c0_49, %c0_50, %c0_51, %c0_52] : memref<1x1x64x4xf32, #tpu.memory_space<vmem>>, vector<1x1x64x4xf32>
      %65 = vector.shape_cast %64 : vector<1x1x64x4xf32> to vector<64x4xf32>
      %c0_53 = arith.constant 0 : index
      %c0_54 = arith.constant 0 : index
      %66 = vector.load %arg13[%c0_53, %c0_54] : memref<4x4xf32, #tpu.memory_space<vmem>>, vector<4x4xf32>
      %cst_55 = arith.constant dense<0.000000e+00> : vector<64x4xf32>
      %67 = tpu.matmul %65, %66, %cst_55 {dimension_numbers = #tpu.dot_dimension_numbers<[1], [0], [0], [1], [0, 0, 1, 1], [], []>} : vector<64x4xf32>, vector<4x4xf32>, vector<64x4xf32> -> vector<64x4xf32>
      %c0_56 = arith.constant 0 : index
      %c0_57 = arith.constant 0 : index
      %68 = vector.load %arg14[%c0_56, %c0_57] : memref<1x4xf32, #tpu.memory_space<vmem>>, vector<1x4xf32>
      %69 = vector.broadcast %68 : vector<1x4xf32> to vector<64x4xf32>
      %70 = arith.addf %67, %69 : vector<64x4xf32>
      %71 = vector.extract_strided_slice %70 {offsets = [0, 0], sizes = [64, 2], strides = [1, 1]} : vector<64x4xf32> to vector<64x2xf32>
      %c0_58 = arith.constant 0 : index
      %c0_59 = arith.constant 0 : index
      %c0_60 = arith.constant 0 : index
      %c0_61 = arith.constant 0 : index
      %72 = vector.load %arg7[%c0_58, %c0_59, %c0_60, %c0_61] : memref<1x1x64x2xf32, #tpu.memory_space<vmem>>, vector<1x1x64x2xf32>
      %73 = vector.shape_cast %72 : vector<1x1x64x2xf32> to vector<64x2xf32>
      %74 = arith.addf %71, %73 : vector<64x2xf32>
      %75 = vector.extract_strided_slice %70 {offsets = [0, 2], sizes = [64, 2], strides = [1, 1]} : vector<64x4xf32> to vector<64x2xf32>
      %76 = arith.truncf %74 : vector<64x2xf32> to vector<64x2xbf16>
      %c0_62 = arith.constant 0 : index
      %c0_63 = arith.constant 0 : index
      %77 = vector.load %arg21[%c0_62, %c0_63] : memref<64x2xbf16, #tpu.memory_space<vmem>>, vector<64x2xbf16>
      tpu.vector_store %arg21[%c0_62, %c0_63], %76 {strides = array<i32>} : memref<64x2xbf16, #tpu.memory_space<vmem>>, vector<64x2xbf16>,
      %78 = arith.truncf %75 : vector<64x2xf32> to vector<64x2xbf16>
      %c0_64 = arith.constant 0 : index
      %c0_65 = arith.constant 0 : index
      %79 = vector.load %arg22[%c0_64, %c0_65] : memref<64x2xbf16, #tpu.memory_space<vmem>>, vector<64x2xbf16>
      tpu.vector_store %arg22[%c0_64, %c0_65], %78 {strides = array<i32>} : memref<64x2xbf16, #tpu.memory_space<vmem>>, vector<64x2xbf16>,
    } else {
    }
    %c0 = arith.constant 0 : index
    %c0_1 = arith.constant 0 : index
    %c0_2 = arith.constant 0 : index
    %c0_3 = arith.constant 0 : index
    %3 = vector.load %arg3[%c0, %c0_1, %c0_2, %c0_3] : memref<1x1x64x4xf32, #tpu.memory_space<vmem>>, vector<1x1x64x4xf32>
    %4 = vector.shape_cast %3 : vector<1x1x64x4xf32> to vector<64x4xf32>
    %c0_4 = arith.constant 0 : index
    %c0_5 = arith.constant 0 : index
    %5 = vector.load %arg10[%c0_4, %c0_5] : memref<4x2xf32, #tpu.memory_space<vmem>>, vector<4x2xf32>
    %cst = arith.constant dense<0.000000e+00> : vector<64x2xf32>
    %6 = tpu.matmul %4, %5, %cst {dimension_numbers = #tpu.dot_dimension_numbers<[1], [0], [0], [1], [0, 0, 1, 1], [], []>} : vector<64x4xf32>, vector<4x2xf32>, vector<64x2xf32> -> vector<64x2xf32>
    %c0_6 = arith.constant 0 : index
    %c0_7 = arith.constant 0 : index
    %c0_8 = arith.constant 0 : index
    %c0_9 = arith.constant 0 : index
    %7 = vector.load %arg5[%c0_6, %c0_7, %c0_8, %c0_9] : memref<1x1x64x1xf32, #tpu.memory_space<vmem>>, vector<1x1x64x1xf32>
    %8 = vector.shape_cast %7 : vector<1x1x64x1xf32> to vector<64x1xf32>
    %cst_10 = arith.constant 1.250000e-01 : f32
    %9 = vector.broadcast %cst_10 : f32 to vector<64x1xf32>
    %10 = arith.mulf %8, %9 : vector<64x1xf32>
    %c0_11 = arith.constant 0 : index
    %c0_12 = arith.constant 0 : index
    %11 = vector.load %arg11[%c0_11, %c0_12] : memref<1x2xf32, #tpu.memory_space<vmem>>, vector<1x2xf32>
    %12 = vector.broadcast %10 : vector<64x1xf32> to vector<64x2xf32>
    %13 = vector.broadcast %11 : vector<1x2xf32> to vector<64x2xf32>
    %14 = arith.mulf %12, %13 : vector<64x2xf32>
    %15 = arith.addf %6, %14 : vector<64x2xf32>
    %c0_13 = arith.constant 0 : index
    %c0_14 = arith.constant 0 : index
    %16 = vector.load %arg12[%c0_13, %c0_14] : memref<1x2xf32, #tpu.memory_space<vmem>>, vector<1x2xf32>
    %17 = vector.broadcast %16 : vector<1x2xf32> to vector<64x2xf32>
    %18 = arith.addf %15, %17 : vector<64x2xf32>
    %c0_15 = arith.constant 0 : index
    %c0_16 = arith.constant 0 : index
    %c0_17 = arith.constant 0 : index
    %c0_18 = arith.constant 0 : index
    %19 = vector.load %arg6[%c0_15, %c0_16, %c0_17, %c0_18] : memref<1x1x64x2xf32, #tpu.memory_space<vmem>>, vector<1x1x64x2xf32>
    %20 = vector.shape_cast %19 : vector<1x1x64x2xf32> to vector<64x2xf32>
    %21 = arith.addf %18, %20 : vector<64x2xf32>
    %22 = arith.truncf %21 : vector<64x2xf32> to vector<64x2xbf16>
    %c0_19 = arith.constant 0 : index
    %c0_20 = arith.constant 0 : index
    %23 = vector.load %arg21[%c0_19, %c0_20] : memref<64x2xbf16, #tpu.memory_space<vmem>>, vector<64x2xbf16>
    %cst_21 = arith.constant dense<0.000000e+00> : vector<64x64xf32>
    %24 = tpu.matmul %22, %23, %cst_21 {dimension_numbers = #tpu.dot_dimension_numbers<[1], [1], [0], [0], [0, 0, 1, 0], [], []>} : vector<64x2xbf16>, vector<64x2xbf16>, vector<64x64xf32> -> vector<64x64xf32>
    %cst_22 = arith.constant dense<0xFF800000> : vector<64xf32>
    %25 = vector.multi_reduction <maximumf>, %24, %cst_22 [1] : vector<64x64xf32> to vector<64xf32>
    %26 = vector.shape_cast %25 : vector<64xf32> to vector<64x1xf32>
    %27 = vector.broadcast %26 : vector<64x1xf32> to vector<64x64xf32>
    %28 = arith.subf %24, %27 : vector<64x64xf32>
    %29 = math.exp %28 : vector<64x64xf32>
    %cst_23 = arith.constant dense<0.000000e+00> : vector<64xf32>
    %30 = vector.multi_reduction <add>, %29, %cst_23 [1] : vector<64x64xf32> to vector<64xf32>
    %31 = vector.shape_cast %30 : vector<64xf32> to vector<64x1xf32>
    %32 = tpu.reciprocal %31 {approx = true} : vector<64x1xf32> -> vector<64x1xf32>
    %c0_24 = arith.constant 0 : index
    %c0_25 = arith.constant 0 : index
    %33 = vector.load %arg9[%c0_24, %c0_25] : memref<1x64xf32, #tpu.memory_space<vmem>>, vector<1x64xf32>
    %34 = vector.broadcast %33 : vector<1x64xf32> to vector<64x64xf32>
    %35 = arith.mulf %29, %34 : vector<64x64xf32>
    %cst_26 = arith.constant dense<0.000000e+00> : vector<64xf32>
    %36 = vector.multi_reduction <add>, %35, %cst_26 [1] : vector<64x64xf32> to vector<64xf32>
    %37 = vector.shape_cast %36 : vector<64xf32> to vector<64x1xf32>
    %38 = arith.mulf %37, %32 : vector<64x1xf32>
    %c0_27 = arith.constant 0 : index
    %c0_28 = arith.constant 0 : index
    %39 = vector.load %arg8[%c0_27, %c0_28] : memref<64x1xf32, #tpu.memory_space<vmem>>, vector<64x1xf32>
    %40 = arith.subf %39, %38 : vector<64x1xf32>
    %41 = arith.truncf %29 : vector<64x64xf32> to vector<64x64xbf16>
    %c0_29 = arith.constant 0 : index
    %c0_30 = arith.constant 0 : index
    %42 = vector.load %arg22[%c0_29, %c0_30] : memref<64x2xbf16, #tpu.memory_space<vmem>>, vector<64x2xbf16>
    %cst_31 = arith.constant dense<0.000000e+00> : vector<64x2xf32>
    %43 = tpu.matmul %41, %42, %cst_31 {dimension_numbers = #tpu.dot_dimension_numbers<[1], [0], [0], [1], [0, 0, 1, 1], [], []>} : vector<64x64xbf16>, vector<64x2xbf16>, vector<64x2xf32> -> vector<64x2xf32>
    %44 = vector.broadcast %32 : vector<64x1xf32> to vector<64x2xf32>
    %45 = arith.mulf %43, %44 : vector<64x2xf32>
    %c0_32 = arith.constant 0 : index
    %c0_33 = arith.constant 0 : index
    %46 = vector.load %arg15[%c0_32, %c0_33] : memref<2x4xf32, #tpu.memory_space<vmem>>, vector<2x4xf32>
    %cst_34 = arith.constant dense<0.000000e+00> : vector<64x4xf32>
    %47 = tpu.matmul %45, %46, %cst_34 {dimension_numbers = #tpu.dot_dimension_numbers<[1], [0], [0], [1], [0, 0, 1, 1], [], []>} : vector<64x2xf32>, vector<2x4xf32>, vector<64x4xf32> -> vector<64x4xf32>
    %c0_35 = arith.constant 0 : index
    %c0_36 = arith.constant 0 : index
    %48 = vector.load %arg16[%c0_35, %c0_36] : memref<1x4xf32, #tpu.memory_space<vmem>>, vector<1x4xf32>
    %49 = vector.broadcast %48 : vector<1x4xf32> to vector<64x4xf32>
    %50 = arith.addf %47, %49 : vector<64x4xf32>
    %c0_37 = arith.constant 0 : index
    %c0_38 = arith.constant 0 : index
    %51 = vector.load %arg17[%c0_37, %c0_38] : memref<1x4xf32, #tpu.memory_space<vmem>>, vector<1x4xf32>
    %52 = vector.broadcast %51 : vector<1x4xf32> to vector<64x4xf32>
    %53 = arith.mulf %50, %52 : vector<64x4xf32>
    %c0_39 = arith.constant 0 : index
    %c0_40 = arith.constant 0 : index
    %54 = vector.load %arg18[%c0_39, %c0_40] : memref<1x4xf32, #tpu.memory_space<vmem>>, vector<1x4xf32>
    %55 = vector.broadcast %54 : vector<1x4xf32> to vector<64x4xf32>
    %56 = arith.addf %53, %55 : vector<64x4xf32>
    %57 = arith.addf %4, %56 : vector<64x4xf32>
    %c0_41 = arith.constant 0 : index
    %c0_42 = arith.constant 0 : index
    %c0_43 = arith.constant 0 : index
    %c0_44 = arith.constant 0 : index
    %58 = vector.load %arg19[%c0_41, %c0_42, %c0_43, %c0_44] : memref<1x1x64x4xf32, #tpu.memory_space<vmem>>, vector<1x1x64x4xf32>
    %59 = vector.shape_cast %58 : vector<1x1x64x4xf32> to vector<64x4xf32>
    %60 = vector.shape_cast %57 : vector<64x4xf32> to vector<1x1x64x4xf32>
    tpu.vector_store %arg19[%c0_41, %c0_42, %c0_43, %c0_44], %60 {strides = array<i32>} : memref<1x1x64x4xf32, #tpu.memory_space<vmem>>, vector<1x1x64x4xf32>,
    %c0_45 = arith.constant 0 : index
    %c0_46 = arith.constant 0 : index
    %c0_47 = arith.constant 0 : index
    %c0_48 = arith.constant 0 : index
    %61 = vector.load %arg20[%c0_45, %c0_46, %c0_47, %c0_48] : memref<1x1x64x1xf32, #tpu.memory_space<vmem>>, vector<1x1x64x1xf32>
    %62 = vector.shape_cast %61 : vector<1x1x64x1xf32> to vector<64x1xf32>
    %63 = vector.shape_cast %40 : vector<64x1xf32> to vector<1x1x64x1xf32>
    tpu.vector_store %arg20[%c0_45, %c0_46, %c0_47, %c0_48], %63 {strides = array<i32>} : memref<1x1x64x1xf32, #tpu.memory_space<vmem>>, vector<1x1x64x1xf32>,
    return
  }
  func.func @transform_0(%arg0: i32, %arg1: i32, %arg2: i32) -> (i32, i32, i32, i32) {
    %c0_i32 = arith.constant 0 : i32
    %c0_i32_0 = arith.constant 0 : i32
    return %arg0, %arg1, %arg2, %c0_i32 : i32, i32, i32, i32
  }
  func.func @transform_1(%arg0: i32, %arg1: i32, %arg2: i32) -> (i32, i32, i32, i32) {
    %c1_i32 = arith.constant 1 : i32
    %0 = arith.subi %c1_i32, %arg1 : i32
    %c0_i32 = arith.constant 0 : i32
    %c0_i32_0 = arith.constant 0 : i32
    %c0_i32_1 = arith.constant 0 : i32
    return %arg0, %0, %c0_i32, %c0_i32_0 : i32, i32, i32, i32
  }
  func.func @transform_2(%arg0: i32, %arg1: i32, %arg2: i32) -> (i32, i32, i32, i32) {
    %c0_i32 = arith.constant 0 : i32
    %c0_i32_0 = arith.constant 0 : i32
    return %arg0, %arg1, %arg2, %c0_i32 : i32, i32, i32, i32
  }
  func.func @transform_3(%arg0: i32, %arg1: i32, %arg2: i32) -> (i32, i32, i32, i32) {
    %c0_i32 = arith.constant 0 : i32
    %c0_i32_0 = arith.constant 0 : i32
    return %arg0, %arg1, %arg2, %c0_i32 : i32, i32, i32, i32
  }
  func.func @transform_4(%arg0: i32, %arg1: i32, %arg2: i32) -> (i32, i32, i32, i32) {
    %c1_i32 = arith.constant 1 : i32
    %0 = arith.subi %c1_i32, %arg1 : i32
    %c0_i32 = arith.constant 0 : i32
    %c0_i32_0 = arith.constant 0 : i32
    %c0_i32_1 = arith.constant 0 : i32
    return %arg0, %0, %c0_i32, %c0_i32_0 : i32, i32, i32, i32
  }
  func.func @transform_5(%arg0: i32, %arg1: i32, %arg2: i32) -> (i32, i32) {
    %c0_i32 = arith.constant 0 : i32
    %c0_i32_0 = arith.constant 0 : i32
    return %arg2, %c0_i32 : i32, i32
  }
  func.func @transform_6(%arg0: i32, %arg1: i32, %arg2: i32) -> (i32, i32) {
    %c0_i32 = arith.constant 0 : i32
    %c0_i32_0 = arith.constant 0 : i32
    %c0_i32_1 = arith.constant 0 : i32
    return %c0_i32, %c0_i32_0 : i32, i32
  }
  func.func @transform_7(%arg0: i32, %arg1: i32, %arg2: i32) -> (i32, i32) {
    %c0_i32 = arith.constant 0 : i32
    %c0_i32_0 = arith.constant 0 : i32
    %c0_i32_1 = arith.constant 0 : i32
    return %c0_i32, %c0_i32_0 : i32, i32
  }
  func.func @transform_8(%arg0: i32, %arg1: i32, %arg2: i32) -> (i32, i32) {
    %c0_i32 = arith.constant 0 : i32
    %c0_i32_0 = arith.constant 0 : i32
    %c0_i32_1 = arith.constant 0 : i32
    return %c0_i32, %c0_i32_0 : i32, i32
  }
  func.func @transform_9(%arg0: i32, %arg1: i32, %arg2: i32) -> (i32, i32) {
    %c0_i32 = arith.constant 0 : i32
    %c0_i32_0 = arith.constant 0 : i32
    %c0_i32_1 = arith.constant 0 : i32
    return %c0_i32, %c0_i32_0 : i32, i32
  }
  func.func @transform_10(%arg0: i32, %arg1: i32, %arg2: i32) -> (i32, i32) {
    %c0_i32 = arith.constant 0 : i32
    %c0_i32_0 = arith.constant 0 : i32
    %c0_i32_1 = arith.constant 0 : i32
    return %c0_i32, %c0_i32_0 : i32, i32
  }
  func.func @transform_11(%arg0: i32, %arg1: i32, %arg2: i32) -> (i32, i32) {
    %c0_i32 = arith.constant 0 : i32
    %c0_i32_0 = arith.constant 0 : i32
    %c0_i32_1 = arith.constant 0 : i32
    return %c0_i32, %c0_i32_0 : i32, i32
  }
  func.func @transform_12(%arg0: i32, %arg1: i32, %arg2: i32) -> (i32, i32) {
    %c0_i32 = arith.constant 0 : i32
    %c0_i32_0 = arith.constant 0 : i32
    %c0_i32_1 = arith.constant 0 : i32
    return %c0_i32, %c0_i32_0 : i32, i32
  }
  func.func @transform_13(%arg0: i32, %arg1: i32, %arg2: i32) -> (i32, i32) {
    %c0_i32 = arith.constant 0 : i32
    %c0_i32_0 = arith.constant 0 : i32
    %c0_i32_1 = arith.constant 0 : i32
    return %c0_i32, %c0_i32_0 : i32, i32
  }
  func.func @transform_14(%arg0: i32, %arg1: i32, %arg2: i32) -> (i32, i32) {
    %c0_i32 = arith.constant 0 : i32
    %c0_i32_0 = arith.constant 0 : i32
    %c0_i32_1 = arith.constant 0 : i32
    return %c0_i32, %c0_i32_0 : i32, i32
  }
  func.func @transform_15(%arg0: i32, %arg1: i32, %arg2: i32) -> (i32, i32) {
    %c0_i32 = arith.constant 0 : i32
    %c0_i32_0 = arith.constant 0 : i32
    %c0_i32_1 = arith.constant 0 : i32
    return %c0_i32, %c0_i32_0 : i32, i32
  }
  func.func @transform_16(%arg0: i32, %arg1: i32, %arg2: i32) -> (i32, i32, i32, i32) {
    %c0_i32 = arith.constant 0 : i32
    %c0_i32_0 = arith.constant 0 : i32
    return %arg0, %arg1, %arg2, %c0_i32 : i32, i32, i32, i32
  }
  func.func @transform_17(%arg0: i32, %arg1: i32, %arg2: i32) -> (i32, i32, i32, i32) {
    %c0_i32 = arith.constant 0 : i32
    %c0_i32_0 = arith.constant 0 : i32
    return %arg0, %arg1, %arg2, %c0_i32 : i32, i32, i32, i32
  }
}

</mosaic_0001>

<bundles_post_ra>
// kernel: tpu_custom_call.1
= control target key start
LH: loop header
LB: loop body
LE: loop exit
PB: predicated region body
PF: predicated region fallthrough
CT: control target
= control target key end

     0   :  { %s2244_s24 = smov 0   ;;  %s2246_s25 = smov 0   ;;  %s2575_s0 = inlined_call_operand.vmem [shape: f32[2,2,64,4], index: 0, kind: input, shape index: {}]   ;;  %s2576_s1 = inlined_call_operand.vmem [shape: f32[2,2,64,4], index: 1, kind: input, shape index: {}]   ;;  %s2577_s2 = inlined_call_operand.vmem [shape: f32[2,2,64,1], index: 2, kind: input, shape index: {}]   ;;  %s2578_s3 = inlined_call_operand.vmem [shape: f32[2,2,64,2], index: 3, kind: input, shape index: {}]   ;;  %s2579_s4 = inlined_call_operand.vmem [shape: f32[2,2,64,2], index: 4, kind: input, shape index: {}]   ;;  %s2580_s5 = inlined_call_operand.vmem [shape: f32[64,1], index: 5, kind: input, shape index: {}]   ;;  %s2581_s6 = inlined_call_operand.vmem [shape: f32[1,64], index: 6, kind: input, shape index: {}]   ;;  %s2582_s7 = inlined_call_operand.vmem [shape: f32[4,2], index: 7, kind: input, shape index: {}]   ;;  %s2583_s8 = inlined_call_operand.vmem [shape: f32[1,2], index: 8, kind: input, shape index: {}]   ;;  %s2584_s9 = inlined_call_operand.vmem [shape: f32[1,2], index: 9, kind: input, shape index: {}]   ;;  %s2585_s10 = inlined_call_operand.vmem [shape: f32[4,4], index: 10, kind: input, shape index: {}]   ;;  %s2586_s11 = inlined_call_operand.vmem [shape: f32[1,4], index: 11, kind: input, shape index: {}]   ;;  %s2587_s12 = inlined_call_operand.vmem [shape: f32[2,4], index: 12, kind: input, shape index: {}]   ;;  %s2588_s13 = inlined_call_operand.vmem [shape: f32[1,4], index: 13, kind: input, shape index: {}]   ;;  %s2589_s14 = inlined_call_operand.vmem [shape: f32[1,4], index: 14, kind: input, shape index: {}]   ;;  %s2590_s15 = inlined_call_operand.vmem [shape: f32[1,4], index: 15, kind: input, shape index: {}]   ;;  %s2591_s16 = inlined_call_operand.vmem [shape: f32[2,2,64,4], index: 16, kind: output, shape index: {0}]   ;;  %s2592_s17 = inlined_call_operand.vmem [shape: f32[2,2,64,1], index: 17, kind: output, shape index: {1}]  }
   0x1   :  { %2593 = sst [smem:[#allocation4_spill]] %s2575_s0  ;;  %s2248_s26 = smov 0  }
   0x2   :  { %2594 = sst [smem:[#allocation5_spill]] %s2576_s1  ;;  %s2250_s27 = smov 0  }
   0x3   :  { %2595 = sst [smem:[#allocation6_spill]] %s2582_s7  ;;  %s2252_s28 = smov 0  }
   0x4   :  { %2596 = sst [smem:[#allocation7_spill]] %s2585_s10 }
   0x5 LB: > { %s43_s29 = sadd.s32 1, %s2142_s26  ;;  %s47_s0 = sadd.s32 1, %s2146_s27  ;;  %s2150_s28 = sphi %s2252_s28, %s28_s28   ;;  %s2146_s27 = sphi %s2250_s27, %s2604_s27   ;;  %s2142_s26 = sphi %s2248_s26, %s2603_s26   ;;  %s2138_s25 = sphi %s2246_s25, %s2602_s25   ;;  %s2134_s24 = sphi %s2244_s24, %s2601_s24  }
   0x6   : > { %p45_p0 = scmp.ge.s32.totalorder %s43_s29, 2  ;;  %p1927_p1 = scmp.ge.s32.totalorder %s2150_s28, 1 }
   0x7   : > { %p627_p2 = scmp.lt.s32.totalorder %s2150_s28, 5 }
   0x8   : > { %s2606_s29 = smov (%p45_p0, %s43_s29), 0  ;;  %s2608_s0 = smov (!%p45_p0, %s47_s0), %s2146_s27 }
   0x9   : > { %p628_p3 = pnand %p1927_p1, %p627_p2  ;;  %p49_p4 = scmp.ge.s32.totalorder %s2608_s0, 2 }
   0xa   : > { %s2597_s10 = sld [smem:[#allocation7_spill]] (!%p628_p3)  ;;  %p760_p5 = scmp.lt.s32.totalorder (!%p628_p3), %s2138_s25, 1 }
   0xb   : > { %s2610_s0 = smov (%p49_p4, %s2608_s0), 0  ;;  %631 = sbr.rel (%p628_p3) target bundleno = 812 (0x32c), region = 84 }
   0xc   : > { %s773_s19 = ssub.s32 (!%p628_p3), 1, %s2134_s24  ;;  %s2598_s7 = sld [smem:[#allocation6_spill]] (!%p628_p3) }
   0xd   : > { %p776_p6 = scmp.lt.s32.totalorder (!%p628_p3), %s773_s19, 1  ;;  %p762_p7 = scmp.lt.s32.totalorder (!%p628_p3), %s2134_s24, 1 }
   0xe   : > { %s2599_s20 = sld [smem:[#allocation5_spill]] (!%p628_p3) }
   0xf   : > { %s2600_s1 = sld [smem:[#allocation4_spill]] (!%p628_p3) }
  0x10   : > { %v870_v0 = vld [vmem:[%s2597_s10] sm:$0xf]  ;;  %vm900_vm0 = vcmask 1043456   ;;  %s2612_s25 = smov (!%p760_p5, %s2138_s25), 1  ;;  %s2614_s19 = smov (!%p776_p6, %s773_s19), 1  ;;  %vm875_vm1 = vcmask 31744  }
  0x11   : > { %2026 = vmatpush.msk.msra.mxu1 %vm900_vm0, %v870_v0  ;;  %2027 = vmatpush.msk.msra.mxu3 %vm900_vm0, %v870_v0  ;;  %s1929_s21 = sshll.u32 %s2612_s25, 4  ;;  %s2616_s24 = smov (!%p762_p7, %s2134_s24), 1  ;;  %v2152_v9 = vmov 0   ;;  %v2073_v35 = vld [vmem:[%s2586_s11] ss:$0 sm:$0xff]  ;;  %vm969_vm2 = vcmask 11264  }
  0x12   : > { %v1034_v1 = vld [vmem:[%s2598_s7] sm:$0xf]  ;;  %1949 = vmatpush.msk.msra.mxu0 %vm900_vm0, %v870_v0  ;;  %s1931_s22 = sshll.u32 %s2614_s19, 3  ;;  %s1928_s18 = sshll.u32 %s2616_s24, 3  ;;  %2070 = vset.pattern.permute.xlu0 %v2152_v9  ;;  %vm1233_vm3 = vcmask 15360   ;;  %vm1287_vm4 = vcmask 523264  }
  0x13   : > { %1958 = vmatpush.msk.msrb.mxu1 %vm900_vm0, %v1034_v1  ;;  %s2285_s23 = sadd.s32 %s1931_s22, %s1929_s21  ;;  %s769_s25 = sadd.s32 %s1929_s21, %s1928_s18  ;;  %2071 = vset.pattern.permute.xlu1 %v2152_v9  ;;  %vm1542_vm5 = vcmask 1041408   ;;  %vm1627_vm6 = vcmask 7168  }
  0x14   : > { %s1933_s30 = sshll.u32 %s2285_s23, 3  ;;  %s2296_s19 = sshll.u32 %s769_s25, 3  ;;  %2072 = vset.pattern.permute.xlu2 %v2152_v9 }
  0x15   : > { %s782_s7 = scalar_lea.vmem %s2599_s20, %s1933_s30  ;;  %s2302_s10 = scalar_lea.vmem %s2577_s2, %s2296_s19 }
  0x16   : > { %v864_v2 = vld [vmem:[%s782_s7 + $0x10] sm:$0xff]  ;;  %v867_v3 = vld [vmem:[%s782_s7 + $0x28] sm:$0xff]  ;;  %v862_v4 = vld [vmem:[%s782_s7] sm:$0xff]  ;;  %s2315_s20 = scalar_lea.vmem %s2600_s1, %s2296_s19  ;;  %s2368_s24 = scalar_lea.vmem %s2579_s4, %s1933_s30 }
  0x17   : > { %1952 = vmatmul.msk.f32.vlgmr.msra.gmra.mxu1 %vm875_vm1, %v864_v2  ;;  %1955 = vmatmul.msk.f32.vlgmr.msra.gmra.mxu3 %vm875_vm1, %v867_v3  ;;  %v865_v5 = vld [vmem:[%s782_s7 + $0x18] sm:$0xff]  ;;  %v868_v6 = vld [vmem:[%s782_s7 + $0x30] sm:$0xff]  ;;  %v863_v7 = vld [vmem:[%s782_s7 + $0x8] sm:$0xff]  ;;  %s2153_s23 = smov 126   ;;  %s2410_s25 = scalar_lea.vmem %s2578_s3, %s2296_s19 }
  0x18   : > { %1950 = vmatmul.msk.f32.vlgmr.msra.gmra.mxu0 %vm875_vm1, %v862_v4  ;;  %v1035_v8 = vld [vmem:[%s2302_s10] sm:$0xff]  ;;  %v869_v12 = vld [vmem:[%s782_s7 + $0x38] sm:$0xff]  ;;  %v1036_v13 = vld [vmem:[%s2302_s10 + $0x8] sm:$0xff] }
  0x19   : > { %v1043_v10 = vmul.f32 0.125, %v1035_v8  ;;  %v866_v11 = vld [vmem:[%s782_s7 + $0x20] sm:$0xff]  ;;  %v1044_v14 = vmul.f32 0.125, %v1036_v13  ;;  %v1037_v16 = vld [vmem:[%s2302_s10 + $0x10] sm:$0xff]  ;;  %v2325_v20 = vld [vmem:[%s2315_s20 + $0x8] sm:$0xff] }
  0x1a   : > { %v2318_v15 = vld [vmem:[%s2315_s20] sm:$0xff]  ;;  %v1041_v17 = vld [vmem:[%s2302_s10 + $0x30] sm:$0xff]  ;;  %v1045_v18 = vmul.f32 0.125, %v1037_v16  ;;  %v1038_v21 = vld [vmem:[%s2302_s10 + $0x18] sm:$0xff] }
  0x1b   : > { %1054 = vperm.xlu0 %2070, %v1043_v10   ;;  %v1049_v19 = vmul.f32 0.125, %v1041_v17  ;;  %v1046_v22 = vmul.f32 0.125, %v1038_v21  ;;  %v2331_v23 = vld [vmem:[%s2315_s20 + $0x10] sm:$0xff]  ;;  %v1042_v24 = vld [vmem:[%s2302_s10 + $0x38] sm:$0xff]  ;;  %v1039_v27 = vld [vmem:[%s2302_s10 + $0x20] sm:$0xff] }
  0x1c   : > { %1064 = vperm.xlu1 %2071, %v1045_v18   ;;  %v1050_v25 = vmul.f32 0.125, %v1042_v24  ;;  %v2337_v26 = vld [vmem:[%s2315_s20 + $0x18] sm:$0xff]  ;;  %v1047_v28 = vmul.f32 0.125, %v1039_v27  ;;  %v1040_v29 = vld [vmem:[%s2302_s10 + $0x28] sm:$0xff]  ;;  %v2344_v30 = vld [vmem:[%s2315_s20 + $0x20] sm:$0xff] }
  0x1d   : > { %v1048_v31 = vmul.f32 0.125, %v1040_v29  ;;  %v2349_v32 = vld [vmem:[%s2315_s20 + $0x28] sm:$0xff]  ;;  %v2354_v33 = vld [vmem:[%s2315_s20 + $0x30] sm:$0xff]  ;;  %v2359_v34 = vld [vmem:[%s2315_s20 + $0x38] sm:$0xff]  ;;  %s2477_s20 = scalar_lea.vmem %s2592_s17, %s2296_s19 }
  0x1e   : > { %1074 = vperm.xlu2 %2072, %v1047_v28   ;;  %v947_v37 = vld [vmem:[%s2368_s24 + $0x10] sm:$0xff]  ;;  %v945_v40 = vld [vmem:[%s2368_s24] sm:$0xff]  ;;  %v950_v47 = vld [vmem:[%s2368_s24 + $0x28] sm:$0xff] }
  0x1f   : > { %1953 = vmatmul.msk.f32.gmra.mxu1 %vm875_vm1, %v865_v5  ;;  %1956 = vmatmul.msk.f32.gmra.mxu3 %vm875_vm1, %v868_v6  ;;  %v948_v51 = vld [vmem:[%s2368_s24 + $0x18] sm:$0xff]  ;;  %v946_v56 = vld [vmem:[%s2368_s24 + $0x8] sm:$0xff]  ;;  %v951_v0 = vld [vmem:[%s2368_s24 + $0x30] sm:$0xff] }
  0x20   : > { %1951 = vmatmul.msk.f32.gmra.mxu0 %vm875_vm1, %v863_v7  ;;  %v949_v4 = vld [vmem:[%s2368_s24 + $0x20] sm:$0xff]  ;;  %v952_v13 = vld [vmem:[%s2368_s24 + $0x38] sm:$0xff] }
  0x23   : > { %1059 = vperm.xlu0 %2070, %v1044_v14  }
  0x24   : > { %1069 = vperm.xlu1 %2071, %v1046_v22  }
  0x26   : > { %1079 = vperm.xlu2 %2072, %v1048_v31  }
  0x27   : > { %1954 = vmatmul.msk.f32.gmra.mxu1 %vm875_vm1, %v866_v11  ;;  %1957 = vmatmul.msk.f32.gmra.mxu3 %vm875_vm1, %v869_v12 }
  0x2b   : > { %1084 = vperm.xlu0 %2070, %v1049_v19  }
  0x2c   : > { %1089 = vperm.xlu1 %2071, %v1050_v25  }
  0x2f   : > { %1959 = vmatmul.msk.f32.vlgmr.msrb.gmra.mxu1 %vm875_vm1, %v2318_v15 }
  0x37   : > { %1960 = vmatmul.msk.f32.gmra.mxu1 %vm875_vm1, %v2325_v20 }
  0x3f   : > { %1961 = vmatmul.msk.f32.gmra.mxu1 %vm875_vm1, %v2331_v23 }
  0x47   : > { %1962 = vmatmul.msk.f32.gmra.mxu1 %vm875_vm1, %v2337_v26 }
  0x4f   : > { %1963 = vmatmul.msk.f32.gmra.mxu1 %vm875_vm1, %v2344_v30 }
  0x57   : > { %1964 = vmatmul.msk.f32.gmra.mxu1 %vm875_vm1, %v2349_v32 }
  0x5f   : > { %1965 = vmatmul.msk.f32.gmra.mxu1 %vm875_vm1, %v2354_v33 }
  0x67   : > { %1966 = vmatmul.msk.f32.gmra.mxu1 %vm875_vm1, %v2359_v34 }
  0x8d   : > { %v1055_v28 = vpop.permute.xlu0 %1054 }
  0x94   : > { %v927_v36 = vpop.f32.mrf.mxu1 }
  0x95   : > { %v928_v38 = vadd.f32 %v2073_v35, %v927_v36  ;;  %v921_v39 = vpop.f32.mrf.mxu0 }
  0x96   : > { %v922_v43 = vadd.f32 %v2073_v35, %v921_v39 }
  0x97   : > { %v955_v41 = vadd.f32 %v947_v37, %v928_v38  ;;  %v980_v42 = vpack.c.bf16 %v928_v38, %v928_v38  ;;  %v1060_v38 = vpop.permute.xlu0 %1059 }
  0x98   : > { %v953_v45 = vadd.f32 %v945_v40, %v922_v43  ;;  %v978_v18 = vpack.c.bf16 %v922_v43, %v922_v43 }
  0x99   : > { %v963_v44 = vpack.c.bf16 %v955_v41, %v955_v41  ;;  %998 = vrot.lane.b32.xlu0 %v980_v42, %s2153_s23  ;;  %v2075_v42 = vld [vmem:[%s2584_s9] ss:$0 sm:$0xff] }
  0x9a   : > { %v936_v46 = vpop.f32.mrf.mxu3  ;;  %v961_v49 = vpack.c.bf16 %v953_v45, %v953_v45  ;;  %v1065_v45 = vpop.permute.xlu1 %1064 }
  0x9b   : > { %972 = vst.msk [vmem:[#allocation2 + $0x8] sm:$0xf] %vm969_vm2, %v963_v44  ;;  %v937_v48 = vadd.f32 %v2073_v35, %v936_v46 }
  0x9c   : > { %v930_v50 = vpop.f32.mrf.mxu1  ;;  %970 = vst.msk [vmem:[#allocation2] sm:$0xf] %vm969_vm2, %v961_v49 }
  0x9d   : > { %v958_v52 = vadd.f32 %v950_v47, %v937_v48  ;;  %v983_v53 = vpack.c.bf16 %v937_v48, %v937_v48  ;;  %v931_v54 = vadd.f32 %v2073_v35, %v930_v50  ;;  %v924_v55 = vpop.f32.mrf.mxu0  ;;  %v1185_v50 = vld [vmem:[%s2410_s25] sm:$0xff] }
  0x9e   : > { %v925_v60 = vadd.f32 %v2073_v35, %v924_v55 }
  0x9f   : > { %v966_v57 = vpack.c.bf16 %v958_v52, %v958_v52  ;;  %v956_v58 = vadd.f32 %v948_v51, %v931_v54  ;;  %v981_v59 = vpack.c.bf16 %v931_v54, %v931_v54  ;;  %1004 = vrot.lane.b32.xlu2 %v983_v53, %s2153_s23  ;;  %v1186_v51 = vld [vmem:[%s2410_s25 + $0x8] sm:$0xff] }
  0xa0   : > { %v954_v62 = vadd.f32 %v946_v56, %v925_v60  ;;  %v979_v22 = vpack.c.bf16 %v925_v60, %v925_v60  ;;  %v1075_v60 = vpop.permute.xlu2 %1074 }
  0xa1   : > { %975 = vst.msk [vmem:[#allocation2 + $0x14] sm:$0xf] %vm969_vm2, %v966_v57  ;;  %v964_v61 = vpack.c.bf16 %v956_v58, %v956_v58  ;;  %1000 = vrot.lane.b32.xlu1 %v981_v59, %s2153_s23 }
  0xa2   : > { %v939_v63 = vpop.f32.mrf.mxu3  ;;  %v962_v2 = vpack.c.bf16 %v954_v62, %v954_v62  ;;  %v1070_v55 = vpop.permute.xlu1 %1069 }
  0xa3   : > { %973 = vst.msk [vmem:[#allocation2 + $0xc] sm:$0xf] %vm969_vm2, %v964_v61  ;;  %v940_v1 = vadd.f32 %v2073_v35, %v939_v63 }
  0xa4   : > { %v933_v3 = vpop.f32.mrf.mxu1  ;;  %971 = vst.msk [vmem:[#allocation2 + $0x4] sm:$0xf] %vm969_vm2, %v962_v2  ;;  %v1188_v2 = vld [vmem:[%s2410_s25 + $0x18] sm:$0xff] }
  0xa5   : > { %v959_v5 = vadd.f32 %v951_v0, %v940_v1  ;;  %v984_v6 = vpack.c.bf16 %v940_v1, %v940_v1  ;;  %v934_v7 = vadd.f32 %v2073_v35, %v933_v3  ;;  %v1187_v1 = vld [vmem:[%s2410_s25 + $0x10] sm:$0xff] }
  0xa7   : > { %v967_v8 = vpack.c.bf16 %v959_v5, %v959_v5  ;;  %v957_v9 = vadd.f32 %v949_v4, %v934_v7  ;;  %v982_v10 = vpack.c.bf16 %v934_v7, %v934_v7  ;;  %1006 = vrot.lane.b32.xlu2 %v984_v6, %s2153_s23 }
  0xa8   : > { %v1080_v6 = vpop.permute.xlu2 %1079 }
  0xa9   : > { %976 = vst.msk [vmem:[#allocation2 + $0x18] sm:$0xf] %vm969_vm2, %v967_v8  ;;  %v965_v11 = vpack.c.bf16 %v957_v9, %v957_v9  ;;  %1002 = vrot.lane.b32.xlu1 %v982_v10, %s2153_s23 }
  0xaa   : > { %v942_v12 = vpop.f32.mrf.mxu3  ;;  %v2019_v36 = vld [vmem:[#allocation2 + $0x8] sm:$0xff] }
  0xab   : > { %974 = vst.msk [vmem:[#allocation2 + $0x10] sm:$0xf] %vm969_vm2, %v965_v11  ;;  %v943_v14 = vadd.f32 %v2073_v35, %v942_v12  ;;  %v2074_v35 = vld [vmem:[%s2583_s8] ss:$0 sm:$0xff]  ;;  %v1250_v41 = vsel %vm1233_vm3, %v2019_v36, 0 }
  0xac   : > { %v1149_v21 = vpop.f32.mrf.mxu1  ;;  %v1095_v39 = vmul.f32 %v2074_v35, %v1055_v28  ;;  %v1096_v40 = vmul.f32 %v2074_v35, %v1060_v38  ;;  %v2018_v46 = vld [vmem:[#allocation2] sm:$0xff]  ;;  %v1097_v56 = vmul.f32 %v2074_v35, %v1065_v45  ;;  %v1098_v57 = vmul.f32 %v2074_v35, %v1070_v55  ;;  %v1192_v38 = vld [vmem:[%s2410_s25 + $0x38] sm:$0xff] }
  0xad   : > { %v960_v16 = vadd.f32 %v952_v13, %v943_v14  ;;  %v985_v17 = vpack.c.bf16 %v943_v14, %v943_v14  ;;  %v1247_v52 = vsel %vm1233_vm3, %v2018_v46, 0  ;;  %v1099_v7 = vmul.f32 %v2074_v35, %v1075_v60 }
  0xae   : > { %v1150_v43 = vadd.f32 %v1149_v21, %v1095_v39  ;;  %v1100_v8 = vmul.f32 %v2074_v35, %v1080_v6  ;;  %v1090_v21 = vpop.permute.xlu1 %1089 }
  0xaf   : > { %v968_v19 = vpack.c.bf16 %v960_v16, %v960_v16  ;;  %1008 = vrot.lane.b32.xlu0 %v985_v17, %s2153_s23  ;;  %v1189_v16 = vld [vmem:[%s2410_s25 + $0x20] sm:$0xff]  ;;  %v1190_v17 = vld [vmem:[%s2410_s25 + $0x28] sm:$0xff]  ;;  %v1102_v28 = vmul.f32 %v2074_v35, %v1090_v21 }
  0xb0   : > { %v1177_v47 = vadd.f32 %v2075_v42, %v1150_v43 }
  0xb1   : > { %977 = vst.msk [vmem:[#allocation2 + $0x1c] sm:$0xf] %vm969_vm2, %v968_v19  ;;  %994 = vrot.lane.b32.xlu1 %v978_v18, %s2153_s23 }
  0xb2   : > { %v2020_v29 = vld [vmem:[#allocation2 + $0x10] sm:$0xff]  ;;  %v1193_v53 = vadd.f32 %v1185_v50, %v1177_v47 }
  0xb3   : > { %v1253_v31 = vsel %vm1233_vm3, %v2020_v29, 0 }
  0xb4   : > { %v1152_v27 = vpop.f32.mrf.mxu1 }
  0xb5   : > { %v1153_v44 = vadd.f32 %v1152_v27, %v1096_v40 }
  0xb7   : > { %v1178_v48 = vadd.f32 %v2075_v42, %v1153_v44 }
  0xb8   : > { %v2021_v24 = vld [vmem:[#allocation2 + $0x18] sm:$0xff] }
  0xb9   : > { %996 = vrot.lane.b32.xlu1 %v979_v22, %s2153_s23  ;;  %v1256_v25 = vsel %vm1233_vm3, %v2021_v24, 0  ;;  %v1194_v54 = vadd.f32 %v1186_v51, %v1178_v48  ;;  %v1085_v22 = vpop.permute.xlu0 %1084 }
  0xba   : > { %1262 = vmatpush.bf16.xpose.msra.mxu2 %v1256_v25  ;;  %v1101_v29 = vmul.f32 %v2074_v35, %v1085_v22 }
  0xbb   : > { %v1201_v58 = vpack.c.bf16 %v1194_v54, %v1193_v53 }
  0xbc   : > { %v1155_v37 = vpop.f32.mrf.mxu1 }
  0xbd   : > { %v1156_v61 = vadd.f32 %v1155_v37, %v1097_v56 }
  0xbf   : > { %v1179_v63 = vadd.f32 %v2075_v42, %v1156_v61 }
  0xc1   : > { %v1195_v3 = vadd.f32 %v1187_v1, %v1179_v63 }
  0xc2   : > { %1263 = vmatpush.bf16.xpose.msra.mxu2 %v1253_v31 }
  0xc4   : > { %v1158_v49 = vpop.f32.mrf.mxu1 }
  0xc5   : > { %v1159_v62 = vadd.f32 %v1158_v49, %v1098_v57 }
  0xc7   : > { %v1180_v0 = vadd.f32 %v2075_v42, %v1159_v62 }
  0xc9   : > { %v1196_v4 = vadd.f32 %v1188_v2, %v1180_v0 }
  0xca   : > { %1264 = vmatpush.bf16.xpose.msra.mxu2 %v1250_v41  ;;  %v1191_v41 = vld [vmem:[%s2410_s25 + $0x30] sm:$0xff]  ;;  %s2534_s25 = scalar_lea.vmem %s2591_s16, %s2296_s19 }
  0xcb   : > { %v1202_v9 = vpack.c.bf16 %v1196_v4, %v1195_v3 }
  0xcc   : > { %v1161_v59 = vpop.f32.mrf.mxu1 }
  0xcd   : > { %v1162_v10 = vadd.f32 %v1161_v59, %v1099_v7 }
  0xcf   : > { %v1181_v13 = vadd.f32 %v2075_v42, %v1162_v10 }
  0xd1   : > { %v1197_v18 = vadd.f32 %v1189_v16, %v1181_v13 }
  0xd2   : > { %1265 = vmatpush.bf16.xpose.msra.mxu2 %v1247_v52 }
  0xd4   : > { %v1164_v5 = vpop.f32.mrf.mxu1 }
  0xd5   : > { %v1165_v11 = vadd.f32 %v1164_v5, %v1100_v8 }
  0xd7   : > { %v1182_v14 = vadd.f32 %v2075_v42, %v1165_v11 }
  0xd9   : > { %1983 = vmatmul.msk.bf16.vlgmr.msra.gmra.mxu2 %vm1233_vm3, %v1201_v58  ;;  %v1198_v19 = vadd.f32 %v1190_v17, %v1182_v14 }
  0xdb   : > { %v1203_v24 = vpack.c.bf16 %v1198_v19, %v1197_v18 }
  0xdc   : > { %v1167_v12 = vpop.f32.mrf.mxu1 }
  0xdd   : > { %v1168_v36 = vadd.f32 %v1167_v12, %v1101_v29 }
  0xdf   : > { %v1183_v40 = vadd.f32 %v2075_v42, %v1168_v36 }
  0xe1   : > { %v1199_v44 = vadd.f32 %v1191_v41, %v1183_v40 }
  0xe4   : > { %v1170_v25 = vpop.f32.mrf.mxu1 }
  0xe5   : > { %v1171_v31 = vadd.f32 %v1170_v25, %v1102_v28 }
  0xe7   : > { %v1184_v37 = vadd.f32 %v2075_v42, %v1171_v31 }
  0xe9   : > { %1984 = vmatmul.msk.bf16.gmra.mxu2 %vm1233_vm3, %v1202_v9  ;;  %v1200_v43 = vadd.f32 %v1192_v38, %v1184_v37 }
  0xeb   : > { %v1204_v45 = vpack.c.bf16 %v1200_v43, %v1199_v44 }
  0xf9   : > { %v1005_v27 = vpop.permute.xlu2 %1004  ;;  %1985 = vmatmul.msk.bf16.gmra.mxu2 %vm1233_vm3, %v1203_v24 }
  0xfa   : > { %1023 = vst.msk [vmem:[#allocation3 + $0x14] sm:$0xf] %vm969_vm2, %v1005_v27 }
 0x101   : > { %v1007_v39 = vpop.permute.xlu2 %1006 }
 0x102   : > { %1024 = vst.msk [vmem:[#allocation3 + $0x18] sm:$0xf] %vm969_vm2, %v1007_v39 }
 0x109   : > { %1986 = vmatmul.msk.bf16.gmra.mxu2 %vm1233_vm3, %v1204_v45 }
 0x10b   : > { %v999_v46 = vpop.permute.xlu0 %998 }
 0x10c   : > { %1020 = vst.msk [vmem:[#allocation3 + $0x8] sm:$0xf] %vm969_vm2, %v999_v46 }
 0x113   : > { %v1001_v47 = vpop.permute.xlu1 %1000 }
 0x114   : > { %1021 = vst.msk [vmem:[#allocation3 + $0xc] sm:$0xf] %vm969_vm2, %v1001_v47 }
 0x11b   : > { %v1003_v35 = vpop.permute.xlu1 %1002  ;;  %v2023_v52 = vld [vmem:[#allocation3 + $0x8] sm:$0xff] }
 0x11c   : > { %1022 = vst.msk [vmem:[#allocation3 + $0x10] sm:$0xf] %vm969_vm2, %v1003_v35 }
 0x121   : > { %v1009_v48 = vpop.permute.xlu0 %1008 }
 0x122   : > { %1025 = vst.msk [vmem:[#allocation3 + $0x1c] sm:$0xf] %vm969_vm2, %v1009_v48 }
 0x123   : > { %v995_v42 = vpop.permute.xlu1 %994  ;;  %v2024_v51 = vld [vmem:[#allocation3 + $0x10] sm:$0xff] }
 0x124   : > { %1018 = vst.msk [vmem:[#allocation3] sm:$0xf] %vm969_vm2, %v995_v42 }
 0x129   : > { %v2025_v49 = vld [vmem:[#allocation3 + $0x18] sm:$0xff] }
 0x12a   : > { %1480 = vmatpush.bf16.msrb.mxu3 %v2025_v49 }
 0x12b   : > { %v997_v50 = vpop.permute.xlu1 %996 }
 0x12c   : > { %1019 = vst.msk [vmem:[#allocation3 + $0x4] sm:$0xf] %vm969_vm2, %v997_v50  ;;  %v2076_v50 = vld [vmem:[%s2581_s6] ss:$0 sm:$0xff] }
 0x12e   : > { %1481 = vmatpush.bf16.msrb.mxu3 %v2024_v51 }
 0x132   : > { %1482 = vmatpush.bf16.msrb.mxu3 %v2023_v52 }
 0x133   : > { %v2022_v53 = vld [vmem:[#allocation3] sm:$0xff] }
 0x136   : > { %1483 = vmatpush.bf16.msrb.mxu3 %v2022_v53 }
 0x15c   : > { %v1267_v54 = vpop.f32.mrf.mxu2 }
 0x15d   : > { %v1288_v55 = vsel %vm1287_vm4, %v1267_v54, -inf }
 0x15e   : > { %1289 = vmax.xlane.f32.xlu2 %v1288_v55 }
 0x164   : > { %v1269_v56 = vpop.f32.mrf.mxu2 }
 0x165   : > { %v1291_v57 = vsel %vm1287_vm4, %v1269_v56, -inf }
 0x166   : > { %1292 = vmax.xlane.f32.xlu0 %v1291_v57 }
 0x16c   : > { %v1272_v58 = vpop.f32.mrf.mxu2 }
 0x16d   : > { %v1294_v59 = vsel %vm1287_vm4, %v1272_v58, -inf }
 0x16e   : > { %1295 = vmax.xlane.f32.xlu1 %v1294_v59 }
 0x174   : > { %v1274_v60 = vpop.f32.mrf.mxu2 }
 0x175   : > { %v1297_v61 = vsel %vm1287_vm4, %v1274_v60, -inf }
 0x176   : > { %1298 = vmax.xlane.f32.xlu2 %v1297_v61 }
 0x17c   : > { %v1277_v62 = vpop.f32.mrf.mxu2 }
 0x17d   : > { %v1300_v63 = vsel %vm1287_vm4, %v1277_v62, -inf }
 0x17e   : > { %1301 = vmax.xlane.f32.xlu2 %v1300_v63 }
 0x184   : > { %v1279_v0 = vpop.f32.mrf.mxu2 }
 0x185   : > { %v1303_v1 = vsel %vm1287_vm4, %v1279_v0, -inf }
 0x186   : > { %1304 = vmax.xlane.f32.xlu0 %v1303_v1 }
 0x18c   : > { %v1282_v2 = vpop.f32.mrf.mxu2 }
 0x18d   : > { %v1306_v3 = vsel %vm1287_vm4, %v1282_v2, -inf }
 0x18e   : > { %1307 = vmax.xlane.f32.xlu2 %v1306_v3 }
 0x194   : > { %v1284_v4 = vpop.f32.mrf.mxu2 }
 0x195   : > { %v1309_v5 = vsel %vm1287_vm4, %v1284_v4, -inf }
 0x196   : > { %1310 = vmax.xlane.f32.xlu0 %v1309_v5 }
 0x1d1   : > { %v1290_v6 = vpop.xlane.xlu2 %1289 }
 0x1d2   : > { %v1312_v7 = vsub.f32 %v1267_v54, %v1290_v6 }
 0x1d4   : > { %v1320_v8 = vmul.f32 1.442695, %v1312_v7 }
 0x1d6   : > { %2080 = vpow2.f32 %v1320_v8 }
 0x1d9   : > { %v1293_v9 = vpop.xlane.xlu0 %1292 }
 0x1da   : > { %v1313_v10 = vsub.f32 %v1269_v56, %v1293_v9 }
 0x1dc   : > { %v2081_v11 = vpop.eup %2080  ;;  %v1322_v12 = vmul.f32 1.442695, %v1313_v10 }
 0x1dd   : > { %v1336_v13 = vsel %vm1287_vm4, %v2081_v11, 0.0  ;;  %v1372_v52 = vmul.f32 %v2081_v11, %v2076_v50 }
 0x1de   : > { %2082 = vpow2.f32 %v1322_v12  ;;  %1337 = vadd.xlane.f32.xlu2 %v1336_v13 }
 0x1df   : > { %v1380_v56 = vsel %vm1287_vm4, %v1372_v52, 0.0 }
 0x1e1   : > { %v1296_v14 = vpop.xlane.xlu1 %1295 }
 0x1e2   : > { %v1314_v16 = vsub.f32 %v1272_v58, %v1296_v14 }
 0x1e4   : > { %v2083_v17 = vpop.eup %2082  ;;  %v1324_v18 = vmul.f32 1.442695, %v1314_v16 }
 0x1e5   : > { %v1339_v19 = vsel %vm1287_vm4, %v2083_v17, 0.0  ;;  %v1428_v21 = vpack.c.bf16 %v2083_v17, %v2081_v11  ;;  %v1373_v59 = vmul.f32 %v2083_v17, %v2076_v50  ;;  %v1513_v11 = vld [vmem:[%s2587_s12] sm:$0x3] }
 0x1e6   : > { %2084 = vpow2.f32 %v1324_v18  ;;  %1340 = vadd.xlane.f32.xlu0 %v1339_v19  ;;  %2007 = vmatpush.msk.msrb.mxu0 %vm1542_vm5, %v1513_v11  ;;  %v1417_v11 = vld [vmem:[%s2580_s5 + $0x28] sm:$0xff] }
 0x1e7   : > { %2003 = vmatmul.msk.bf16.vlgmr.msrb.gmra.mxu3 %vm1287_vm4, %v1428_v21 }
 0x1e9   : > { %v1299_v22 = vpop.xlane.xlu2 %1298 }
 0x1ea   : > { %v1315_v24 = vsub.f32 %v1274_v60, %v1299_v22 }
 0x1ec   : > { %v2085_v25 = vpop.eup %2084  ;;  %v1326_v27 = vmul.f32 1.442695, %v1315_v24 }
 0x1ed   : > { %v1342_v28 = vsel %vm1287_vm4, %v2085_v25, 0.0  ;;  %v1374_v3 = vmul.f32 %v2085_v25, %v2076_v50 }
 0x1ee   : > { %2086 = vpow2.f32 %v1326_v27  ;;  %1343 = vadd.xlane.f32.xlu1 %v1342_v28 }
 0x1ef   : > { %v1386_v6 = vsel %vm1287_vm4, %v1374_v3, 0.0 }
 0x1f1   : > { %v1302_v29 = vpop.xlane.xlu2 %1301 }
 0x1f2   : > { %v1316_v31 = vsub.f32 %v1277_v62, %v1302_v29  ;;  %v1383_v62 = vsel %vm1287_vm4, %v1373_v59, 0.0 }
 0x1f4   : > { %v2087_v36 = vpop.eup %2086  ;;  %v1328_v37 = vmul.f32 1.442695, %v1316_v31 }
 0x1f5   : > { %v1345_v38 = vsel %vm1287_vm4, %v2087_v36, 0.0  ;;  %v1429_v39 = vpack.c.bf16 %v2087_v36, %v2085_v25  ;;  %v1375_v58 = vmul.f32 %v2087_v36, %v2076_v50  ;;  %v1412_v36 = vld [vmem:[%s2580_s5] sm:$0xff] }
 0x1f6   : > { %2088 = vpow2.f32 %v1328_v37  ;;  %1346 = vadd.xlane.f32.xlu2 %v1345_v38 }
 0x1f7   : > { %2004 = vmatmul.msk.bf16.gmra.mxu3 %vm1287_vm4, %v1429_v39  ;;  %v1389_v61 = vsel %vm1287_vm4, %v1375_v58, 0.0  ;;  %v1416_v58 = vld [vmem:[%s2580_s5 + $0x20] sm:$0xff] }
 0x1f9   : > { %v1305_v40 = vpop.xlane.xlu0 %1304 }
 0x1fa   : > { %v1317_v41 = vsub.f32 %v1279_v0, %v1305_v40 }
 0x1fc   : > { %v2089_v43 = vpop.eup %2088  ;;  %v1330_v44 = vmul.f32 1.442695, %v1317_v41 }
 0x1fd   : > { %v1348_v45 = vsel %vm1287_vm4, %v2089_v43, 0.0 }
 0x1fe   : > { %2090 = vpow2.f32 %v1330_v44  ;;  %1349 = vadd.xlane.f32.xlu0 %v1348_v45  ;;  %v1415_v45 = vld [vmem:[%s2580_s5 + $0x18] sm:$0xff] }
 0x201   : > { %v1308_v46 = vpop.xlane.xlu2 %1307 }
 0x202   : > { %v1318_v47 = vsub.f32 %v1282_v2, %v1308_v46  ;;  %v1376_v2 = vmul.f32 %v2089_v43, %v2076_v50 }
 0x204   : > { %v2091_v35 = vpop.eup %2090  ;;  %v1332_v48 = vmul.f32 1.442695, %v1318_v47  ;;  %v1392_v5 = vsel %vm1287_vm4, %v1376_v2, 0.0  ;;  %v1413_v47 = vld [vmem:[%s2580_s5 + $0x8] sm:$0xff] }
 0x205   : > { %v1351_v42 = vsel %vm1287_vm4, %v2091_v35, 0.0  ;;  %v1430_v49 = vpack.c.bf16 %v2091_v35, %v2089_v43  ;;  %v1377_v8 = vmul.f32 %v2091_v35, %v2076_v50 }
 0x206   : > { %2092 = vpow2.f32 %v1332_v48  ;;  %1352 = vadd.xlane.f32.xlu1 %v1351_v42 }
 0x207   : > { %2005 = vmatmul.msk.bf16.gmra.mxu3 %vm1287_vm4, %v1430_v49  ;;  %v1395_v10 = vsel %vm1287_vm4, %v1377_v8, 0.0  ;;  %v1419_v8 = vld [vmem:[%s2580_s5 + $0x38] sm:$0xff] }
 0x209   : > { %v1311_v51 = vpop.xlane.xlu0 %1310 }
 0x20a   : > { %v1319_v53 = vsub.f32 %v1284_v4, %v1311_v51 }
 0x20c   : > { %v2093_v54 = vpop.eup %2092  ;;  %v1334_v55 = vmul.f32 1.442695, %v1319_v53 }
 0x20d   : > { %v1354_v57 = vsel %vm1287_vm4, %v2093_v54, 0.0  ;;  %v1378_v1 = vmul.f32 %v2093_v54, %v2076_v50 }
 0x20e   : > { %2094 = vpow2.f32 %v1334_v55  ;;  %1381 = vadd.xlane.f32.xlu1 %v1380_v56  ;;  %1355 = vadd.xlane.f32.xlu2 %v1354_v57  ;;  %v1418_v56 = vld [vmem:[%s2580_s5 + $0x30] sm:$0xff] }
 0x20f   : > { %v1398_v4 = vsel %vm1287_vm4, %v1378_v1, 0.0 }
 0x214   : > { %v2095_v60 = vpop.eup %2094 }
 0x215   : > { %v1357_v63 = vsel %vm1287_vm4, %v2095_v60, 0.0  ;;  %v1431_v0 = vpack.c.bf16 %v2095_v60, %v2093_v54  ;;  %v1379_v7 = vmul.f32 %v2095_v60, %v2076_v50 }
 0x216   : > { %1390 = vadd.xlane.f32.xlu1 %v1389_v61  ;;  %1384 = vadd.xlane.f32.xlu2 %v1383_v62 }
 0x217   : > { %1358 = vadd.xlane.f32.xlu0 %v1357_v63  ;;  %2006 = vmatmul.msk.bf16.gmra.mxu3 %vm1287_vm4, %v1431_v0  ;;  %v1401_v9 = vsel %vm1287_vm4, %v1379_v7, 0.0  ;;  %v1414_v63 = vld [vmem:[%s2580_s5 + $0x10] sm:$0xff] }
 0x21e   : > { %1399 = vadd.xlane.f32.xlu1 %v1398_v4  ;;  %1393 = vadd.xlane.f32.xlu2 %v1392_v5 }
 0x21f   : > { %1387 = vadd.xlane.f32.xlu0 %v1386_v6 }
 0x226   : > { %1402 = vadd.xlane.f32.xlu2 %v1401_v9 }
 0x227   : > { %1396 = vadd.xlane.f32.xlu0 %v1395_v10 }
 0x251   : > { %v1338_v12 = vpop.xlane.xlu2 %1337 }
 0x252   : > { %2096 = vrcp.f32 %v1338_v12 }
 0x258   : > { %v2097_v14 = vpop.eup %2096 }
 0x259   : > { %v1341_v13 = vpop.xlane.xlu0 %1340 }
 0x25a   : > { %2098 = vrcp.f32 %v1341_v13 }
 0x260   : > { %v2099_v19 = vpop.eup %2098 }
 0x261   : > { %v1344_v18 = vpop.xlane.xlu1 %1343 }
 0x262   : > { %2100 = vrcp.f32 %v1344_v18 }
 0x268   : > { %v2101_v27 = vpop.eup %2100 }
 0x269   : > { %v1347_v24 = vpop.xlane.xlu2 %1346 }
 0x26a   : > { %v1485_v16 = vpop.f32.mrf.mxu3  ;;  %2102 = vrcp.f32 %v1347_v24  ;;  %v2078_v24 = vld [vmem:[%s2589_s14] ss:$0 sm:$0xff] }
 0x26b   : > { %v1505_v17 = vmul.f32 %v2097_v14, %v1485_v16 }
 0x26d   : > { %2008 = vmatmul.msk.f32.vlgmr.msrb.gmra.mxu0 %vm1233_vm3, %v1505_v17 }
 0x270   : > { %v2103_v39 = vpop.eup %2102 }
 0x271   : > { %v1350_v31 = vpop.xlane.xlu0 %1349 }
 0x272   : > { %v1487_v21 = vpop.f32.mrf.mxu3  ;;  %2104 = vrcp.f32 %v1350_v31 }
 0x273   : > { %v1506_v22 = vmul.f32 %v2099_v19, %v1487_v21 }
 0x275   : > { %2009 = vmatmul.msk.f32.gmra.mxu0 %vm1233_vm3, %v1506_v22  ;;  %v2077_v22 = vld [vmem:[%s2588_s13] ss:$0 sm:$0xff] }
 0x278   : > { %v2105_v48 = vpop.eup %2104 }
 0x279   : > { %v1353_v25 = vpop.xlane.xlu1 %1352 }
 0x27a   : > { %v1490_v28 = vpop.f32.mrf.mxu3 }
 0x27b   : > { %v1507_v29 = vmul.f32 %v2101_v27, %v1490_v28  ;;  %v2079_v28 = vld [vmem:[%s2590_s15] ss:$0 sm:$0xff] }
 0x27d   : > { %2010 = vmatmul.msk.f32.gmra.mxu0 %vm1233_vm3, %v1507_v29 }
 0x281   : > { %v1382_v37 = vpop.xlane.xlu1 %1381  ;;  %v1356_v38 = vpop.xlane.xlu2 %1355 }
 0x282   : > { %v1404_v40 = vmul.f32 %v2097_v14, %v1382_v37  ;;  %v1492_v41 = vpop.f32.mrf.mxu3  ;;  %2106 = vrcp.f32 %v1356_v38 }
 0x283   : > { %v1508_v43 = vmul.f32 %v2103_v39, %v1492_v41  ;;  %2108 = vrcp.f32 %v1353_v25 }
 0x284   : > { %v1420_v44 = vsub.f32 %v1412_v36, %v1404_v40 }
 0x285   : > { %2011 = vmatmul.msk.f32.gmra.mxu0 %vm1233_vm3, %v1508_v43 }
 0x286   : > { %1628 = vst.msk [vmem:[%s2477_s20] sm:$0xff] %vm1627_vm6, %v1420_v44 }
 0x288   : > { %v2107_v55 = vpop.eup %2106 }
 0x289   : > { %v1391_v46 = vpop.xlane.xlu1 %1390  ;;  %v1385_v35 = vpop.xlane.xlu2 %1384 }
 0x28a   : > { %v1407_v42 = vmul.f32 %v2103_v39, %v1391_v46  ;;  %v1405_v49 = vmul.f32 %v2099_v19, %v1385_v35  ;;  %v1359_v50 = vpop.xlane.xlu0 %1358  ;;  %v1495_v51 = vpop.f32.mrf.mxu3 }
 0x28b   : > { %v1509_v52 = vmul.f32 %v2105_v48, %v1495_v51  ;;  %v2109_v60 = vpop.eup %2108  ;;  %2110 = vrcp.f32 %v1359_v50 }
 0x28c   : > { %v1423_v53 = vsub.f32 %v1415_v45, %v1407_v42  ;;  %v1421_v54 = vsub.f32 %v1413_v47, %v1405_v49 }
 0x28d   : > { %2012 = vmatmul.msk.f32.gmra.mxu0 %vm1233_vm3, %v1509_v52 }
 0x28e   : > { %1631 = vst.msk [vmem:[%s2477_s20 + $0x18] sm:$0xff] %vm1627_vm6, %v1423_v53 }
 0x28f   : > { %1629 = vst.msk [vmem:[%s2477_s20 + $0x8] sm:$0xff] %vm1627_vm6, %v1421_v54 }
 0x291   : > { %v1400_v57 = vpop.xlane.xlu1 %1399  ;;  %v1394_v59 = vpop.xlane.xlu2 %1393 }
 0x292   : > { %v1410_v61 = vmul.f32 %v2107_v55, %v1400_v57  ;;  %v1408_v62 = vmul.f32 %v2105_v48, %v1394_v59  ;;  %v1388_v0 = vpop.xlane.xlu0 %1387  ;;  %v1497_v1 = vpop.f32.mrf.mxu3 }
 0x293   : > { %v1406_v2 = vmul.f32 %v2101_v27, %v1388_v0  ;;  %v1510_v3 = vmul.f32 %v2109_v60, %v1497_v1  ;;  %v2111_v7 = vpop.eup %2110 }
 0x294   : > { %v1426_v4 = vsub.f32 %v1418_v56, %v1410_v61  ;;  %v1424_v5 = vsub.f32 %v1416_v58, %v1408_v62 }
 0x295   : > { %v1422_v6 = vsub.f32 %v1414_v63, %v1406_v2  ;;  %2013 = vmatmul.msk.f32.gmra.mxu0 %vm1233_vm3, %v1510_v3 }
 0x296   : > { %1634 = vst.msk [vmem:[%s2477_s20 + $0x30] sm:$0xff] %vm1627_vm6, %v1426_v4 }
 0x297   : > { %1632 = vst.msk [vmem:[%s2477_s20 + $0x20] sm:$0xff] %vm1627_vm6, %v1424_v5 }
 0x298   : > { %1630 = vst.msk [vmem:[%s2477_s20 + $0x10] sm:$0xff] %vm1627_vm6, %v1422_v6 }
 0x299   : > { %v1403_v9 = vpop.xlane.xlu2 %1402 }
 0x29a   : > { %v1411_v10 = vmul.f32 %v2111_v7, %v1403_v9  ;;  %v1397_v12 = vpop.xlane.xlu0 %1396  ;;  %v1500_v13 = vpop.f32.mrf.mxu3 }
 0x29b   : > { %v1409_v14 = vmul.f32 %v2109_v60, %v1397_v12  ;;  %v1511_v16 = vmul.f32 %v2107_v55, %v1500_v13 }
 0x29c   : > { %v1427_v17 = vsub.f32 %v1419_v8, %v1411_v10 }
 0x29d   : > { %v1425_v18 = vsub.f32 %v1417_v11, %v1409_v14  ;;  %2014 = vmatmul.msk.f32.gmra.mxu0 %vm1233_vm3, %v1511_v16 }
 0x29e   : > { %1635 = vst.msk [vmem:[%s2477_s20 + $0x38] sm:$0xff] %vm1627_vm6, %v1427_v17 }
 0x29f   : > { %1633 = vst.msk [vmem:[%s2477_s20 + $0x28] sm:$0xff] %vm1627_vm6, %v1425_v18 }
 0x2a2   : > { %v1502_v19 = vpop.f32.mrf.mxu3 }
 0x2a3   : > { %v1512_v21 = vmul.f32 %v2111_v7, %v1502_v19 }
 0x2a5   : > { %2015 = vmatmul.msk.f32.gmra.mxu0 %vm1233_vm3, %v1512_v21 }
 0x2ea   : > { %v1563_v25 = vpop.f32.mrf.mxu0 }
 0x2eb   : > { %v1564_v27 = vadd.f32 %v2077_v22, %v1563_v25 }
 0x2ed   : > { %v1591_v29 = vmul.f32 %v2078_v24, %v1564_v27 }
 0x2ef   : > { %v1603_v31 = vadd.f32 %v2079_v28, %v1591_v29 }
 0x2f1   : > { %v1611_v36 = vadd.f32 %v1603_v31, %v2318_v15 }
 0x2f2   : > { %v1566_v37 = vpop.f32.mrf.mxu0 }
 0x2f3   : > { %1619 = vst.msk [vmem:[%s2534_s25] sm:$0xff] %vm875_vm1, %v1611_v36  ;;  %v1567_v38 = vadd.f32 %v2077_v22, %v1566_v37 }
 0x2f5   : > { %v1592_v39 = vmul.f32 %v2078_v24, %v1567_v38 }
 0x2f7   : > { %v1604_v40 = vadd.f32 %v2079_v28, %v1592_v39 }
 0x2f9   : > { %v1612_v41 = vadd.f32 %v1604_v40, %v2325_v20 }
 0x2fa   : > { %v1569_v43 = vpop.f32.mrf.mxu0 }
 0x2fb   : > { %1620 = vst.msk [vmem:[%s2534_s25 + $0x8] sm:$0xff] %vm875_vm1, %v1612_v41  ;;  %v1570_v44 = vadd.f32 %v2077_v22, %v1569_v43 }
 0x2fd   : > { %v1593_v45 = vmul.f32 %v2078_v24, %v1570_v44 }
 0x2ff   : > { %v1605_v46 = vadd.f32 %v2079_v28, %v1593_v45 }
 0x301   : > { %v1613_v47 = vadd.f32 %v1605_v46, %v2331_v23 }
 0x302   : > { %v1572_v35 = vpop.f32.mrf.mxu0 }
 0x303   : > { %1621 = vst.msk [vmem:[%s2534_s25 + $0x10] sm:$0xff] %vm875_vm1, %v1613_v47  ;;  %v1573_v15 = vadd.f32 %v2077_v22, %v1572_v35 }
 0x305   : > { %v1594_v48 = vmul.f32 %v2078_v24, %v1573_v15 }
 0x307   : > { %v1606_v42 = vadd.f32 %v2079_v28, %v1594_v48 }
 0x309   : > { %v1614_v49 = vadd.f32 %v1606_v42, %v2337_v26 }
 0x30a   : > { %v1575_v50 = vpop.f32.mrf.mxu0 }
 0x30b   : > { %1622 = vst.msk [vmem:[%s2534_s25 + $0x18] sm:$0xff] %vm875_vm1, %v1614_v49  ;;  %v1576_v20 = vadd.f32 %v2077_v22, %v1575_v50 }
 0x30d   : > { %v1595_v51 = vmul.f32 %v2078_v24, %v1576_v20 }
 0x30f   : > { %v1607_v52 = vadd.f32 %v2079_v28, %v1595_v51 }
 0x311   : > { %v1615_v53 = vadd.f32 %v1607_v52, %v2344_v30 }
 0x312   : > { %v1578_v54 = vpop.f32.mrf.mxu0 }
 0x313   : > { %1623 = vst.msk [vmem:[%s2534_s25 + $0x20] sm:$0xff] %vm875_vm1, %v1615_v53  ;;  %v1579_v23 = vadd.f32 %v2077_v22, %v1578_v54 }
 0x315   : > { %v1596_v55 = vmul.f32 %v2078_v24, %v1579_v23 }
 0x317   : > { %v1608_v56 = vadd.f32 %v2079_v28, %v1596_v55 }
 0x319   : > { %v1616_v57 = vadd.f32 %v1608_v56, %v2349_v32 }
 0x31a   : > { %v1581_v58 = vpop.f32.mrf.mxu0 }
 0x31b   : > { %1624 = vst.msk [vmem:[%s2534_s25 + $0x28] sm:$0xff] %vm875_vm1, %v1616_v57  ;;  %v1582_v26 = vadd.f32 %v2077_v22, %v1581_v58 }
 0x31d   : > { %v1597_v59 = vmul.f32 %v2078_v24, %v1582_v26 }
 0x31f   : > { %v1609_v60 = vadd.f32 %v2079_v28, %v1597_v59 }
 0x321   : > { %v1617_v61 = vadd.f32 %v1609_v60, %v2354_v33 }
 0x322   : > { %v1584_v62 = vpop.f32.mrf.mxu0 }
 0x323   : > { %1625 = vst.msk [vmem:[%s2534_s25 + $0x30] sm:$0xff] %vm875_vm1, %v1617_v61  ;;  %v1585_v30 = vadd.f32 %v2077_v22, %v1584_v62 }
 0x325   : > { %v1598_v63 = vmul.f32 %v2078_v24, %v1585_v30 }
 0x327   : > { %v1610_v0 = vadd.f32 %v2079_v28, %v1598_v63 }
 0x329   : > { %v1618_v1 = vadd.f32 %v1610_v0, %v2359_v34 }
 0x32b   : > { %1626 = vst.msk [vmem:[%s2534_s25 + $0x38] sm:$0xff] %vm875_vm1, %v1618_v1 }
 0x32c PF: > { %s28_s28 = sadd.s32 1, %s2150_s28   ;;  %s2601_s24 = smov %s2142_s26 }
 0x32d   : > { %p25_p8 = scmp.ge.s32.totalorder %s28_s28, 6   ;;  %s2602_s25 = smov %s2146_s27 }
 0x32e   : > { %s2603_s26 = smov %s2606_s29  ;;  %s2604_s27 = smov %s2610_s0 }
 0x32f   :  { %27 = sbr.rel (!%p25_p8) target bundleno = 5 (0x5), region = 145 }

</bundles_post_ra>
